<compile_context>
chip_gen: v7x
topology: tpu7x:2x2x1
jax: 0.10.0
libtpu: 0.0.40
codegen_flags: <defaults>
</compile_context>

<pallas_src>
import math

import jax
import jax.numpy as jnp
from jax.experimental import pallas as pl
from jax.experimental.pallas import tpu as pltpu


def folded_mlp_kernel(x_ref, w_ref, b_ref, o_ref):
    # x_ref: (tm, 784) caller dtype (f32 or bf16), w_ref: (784, 10) bf16,
    # b_ref: (1, 10) f32, o_ref: (tm, 10) f32.
    # Cast to bf16 in VMEM (VPU) so the HBM->VMEM DMA carries the caller's
    # dtype and no wrapper-side convert is materialized.
    x_bf16 = x_ref[...].astype(jnp.bfloat16)
    acc = jnp.dot(x_bf16, w_ref[...],
                  preferred_element_type=jnp.float32)      # (tm, 10) f32 on MXU
    o_ref[...] = (acc + b_ref[...]).astype(o_ref.dtype)    # f32 bias add (VPU)


def fold_params(w1, b1, w2, b2):
    """Fold the two activation-free linears into one.  Do this ONCE per set
    of parameters (not per call) so the per-call weight traffic is ~16 KB."""
    w_folded = (w1.astype(jnp.float32) @ w2.astype(jnp.float32))       # (784, 10)
    b_folded = (b1.astype(jnp.float32) @ w2.astype(jnp.float32)) + b2  # (1, 10)
    return w_folded.astype(jnp.bfloat16), b_folded.astype(jnp.float32)


def _pick_row_tile(batch):
    """Row tile near the HBM-roofline plateau (512-1024 rows), capped so the
    grid has >=4 steps when the batch allows it (v7x megacore sharding), and
    sublane-aligned (multiple of 8).  Ragged batches are handled by a cdiv
    grid + masked last block, not by shrinking the tile."""
    if batch <= 8:
        return batch                       # full-extent block is always legal
    tm = min(1024, batch)
    while tm > 8 and pl.cdiv(batch, tm) < 4:
        tm //= 2
    return max(8, (tm // 8) * 8)


def mnist_logistic_forward(x, w_folded, b_folded, *, tm=None):
    """x: (B, 784) f32 or bf16.  Returns (B, 10) f32."""
    B, D = x.shape
    assert D == 784
    if tm is None:
        tm = _pick_row_tile(B)
    grid = (pl.cdiv(B, tm),)               # ragged last block is masked

    return pl.pallas_call(
        folded_mlp_kernel,
        out_shape=jax.ShapeDtypeStruct((B, 10), jnp.float32),
        grid=grid,
        in_specs=[
            # x: row-tiled, double-buffered/pipelined across the grid.
            pl.BlockSpec((tm, 784), lambda i: (i, 0)),
            # folded weight + bias: constant block index -> DMA'd once and
            # VMEM-resident; single buffer is enough for a constant block.
            pl.BlockSpec((784, 10), lambda i: (0, 0),
                         pipeline_mode=pl.Buffered(1)),
            pl.BlockSpec((1, 10), lambda i: (0, 0),
                         pipeline_mode=pl.Buffered(1)),
        ],
        out_specs=pl.BlockSpec((tm, 10), lambda i: (i, 0)),
        compiler_params=pltpu.CompilerParams(
            # Row blocks are independent -> megacore-shard on v7x.
            dimension_semantics=("parallel",),
        ),
    )(x, w_folded, b_folded)


def init_params(key):
    """Deterministic init mimicking nn.Linear (uniform +/- 1/sqrt(fan_in)).
    Stored as (in, out), i.e. transpose of PyTorch's (out, in)."""
    k1, k2, k3, k4 = jax.random.split(key, 4)
    bound1 = 1.0 / math.sqrt(784)
    bound2 = 1.0 / math.sqrt(250)
    w1 = jax.random.uniform(k1, (784, 250), jnp.float32, -bound1, bound1)
    b1 = jax.random.uniform(k2, (1, 250), jnp.float32, -bound1, bound1)
    w2 = jax.random.uniform(k3, (250, 10), jnp.float32, -bound2, bound2)
    b2 = jax.random.uniform(k4, (1, 10), jnp.float32, -bound2, bound2)
    return w1, b1, w2, b2


if __name__ == "__main__":
    key = jax.random.PRNGKey(0)
    kx, kp = jax.random.split(key)

    bs = 64  # matches the script's batch size
    x = jax.random.uniform(kx, (bs, 784), jnp.float32)  # MNIST-flattened input
    w1, b1, w2, b2 = init_params(kp)

    # One-time param prep (fold + bf16 cast), then the hot-path kernel call.
    w_folded, b_folded = fold_params(w1, b1, w2, b2)
    out = mnist_logistic_forward(x, w_folded, b_folded)
    out = jax.block_until_ready(out)

    # Sanity check against the unfused plain-JAX f32 reference.
    ref = (x @ w1 + b1) @ w2 + b2
    assert out.shape == (bs, 10)
    # bf16 MXU operands -> relaxed tolerance (errors here are ~1e-3 on an
    # output scale of ~0.2).
    assert jnp.allclose(out, ref, atol=2e-2, rtol=2e-2)

    # Also exercise a ragged batch to cover the cdiv-grid masked last block.
    x_ragged = jax.random.uniform(kx, (100, 784), jnp.float32)
    out_r = jax.block_until_ready(mnist_logistic_forward(x_ragged, w_folded, b_folded))
    ref_r = (x_ragged @ w1 + b1) @ w2 + b2
    assert out_r.shape == (100, 10)
    assert jnp.allclose(out_r, ref_r, atol=2e-2, rtol=2e-2)

    print("KERNEL_OK")
</pallas_src>

<mosaic_0001>
module attributes {stable_mosaic.version = 11 : i64} {
  func.func @folded_mlp_kernel(%arg0: i32, %arg1: memref<16x784xf32, #tpu.memory_space<vmem>>, %arg2: memref<784x10xbf16, #tpu.memory_space<vmem>>, %arg3: memref<1x10xf32, #tpu.memory_space<vmem>>, %arg4: memref<16x10xf32, #tpu.memory_space<vmem>>) attributes {dimension_semantics = [#tpu.dimension_semantics<parallel>], iteration_bounds = array<i64: 4>, scalar_prefetch = 0 : i64, scratch_operands = 0 : i64, tpu.core_type = #tpu.core_type<tc>, window_params = [{transform_indices = @transform_0, window_bounds = array<i64: 16, 784>}, {pipeline_mode = #tpu.pipeline_mode<synchronous>, transform_indices = @transform_1, window_bounds = array<i64: 784, 10>}, {pipeline_mode = #tpu.pipeline_mode<synchronous>, transform_indices = @transform_2, window_bounds = array<i64: 1, 10>}, {transform_indices = @transform_3, window_bounds = array<i64: 16, 10>}]} {
    %c0 = arith.constant 0 : index
    %c0_0 = arith.constant 0 : index
    %0 = vector.load %arg1[%c0, %c0_0] : memref<16x784xf32, #tpu.memory_space<vmem>>, vector<16x784xf32>
    %1 = arith.truncf %0 : vector<16x784xf32> to vector<16x784xbf16>
    %c0_1 = arith.constant 0 : index
    %c0_2 = arith.constant 0 : index
    %2 = vector.load %arg2[%c0_1, %c0_2] : memref<784x10xbf16, #tpu.memory_space<vmem>>, vector<784x10xbf16>
    %cst = arith.constant dense<0.000000e+00> : vector<16x10xf32>
    %3 = tpu.matmul %1, %2, %cst {dimension_numbers = #tpu.dot_dimension_numbers<[1], [0], [0], [1], [0, 0, 1, 1], [], []>} : vector<16x784xbf16>, vector<784x10xbf16>, vector<16x10xf32> -> vector<16x10xf32>
    %c0_3 = arith.constant 0 : index
    %c0_4 = arith.constant 0 : index
    %4 = vector.load %arg3[%c0_3, %c0_4] : memref<1x10xf32, #tpu.memory_space<vmem>>, vector<1x10xf32>
    %5 = vector.broadcast %4 : vector<1x10xf32> to vector<16x10xf32>
    %6 = arith.addf %3, %5 : vector<16x10xf32>
    %c0_5 = arith.constant 0 : index
    %c0_6 = arith.constant 0 : index
    %7 = vector.load %arg4[%c0_5, %c0_6] : memref<16x10xf32, #tpu.memory_space<vmem>>, vector<16x10xf32>
    tpu.vector_store %arg4[%c0_5, %c0_6], %6 {strides = array<i32>} : memref<16x10xf32, #tpu.memory_space<vmem>>, vector<16x10xf32>,
    return
  }
  func.func @transform_0(%arg0: i32) -> (i32, i32) {
    %c0_i32 = arith.constant 0 : i32
    %c0_i32_0 = arith.constant 0 : i32
    return %arg0, %c0_i32 : i32, i32
  }
  func.func @transform_1(%arg0: i32) -> (i32, i32) {
    %c0_i32 = arith.constant 0 : i32
    %c0_i32_0 = arith.constant 0 : i32
    %c0_i32_1 = arith.constant 0 : i32
    return %c0_i32, %c0_i32_0 : i32, i32
  }
  func.func @transform_2(%arg0: i32) -> (i32, i32) {
    %c0_i32 = arith.constant 0 : i32
    %c0_i32_0 = arith.constant 0 : i32
    %c0_i32_1 = arith.constant 0 : i32
    return %c0_i32, %c0_i32_0 : i32, i32
  }
  func.func @transform_3(%arg0: i32) -> (i32, i32) {
    %c0_i32 = arith.constant 0 : i32
    %c0_i32_0 = arith.constant 0 : i32
    return %arg0, %c0_i32 : i32, i32
  }
}

</mosaic_0001>

<bundles_post_ra>
// kernel: tpu_custom_call.1
= control target key start
LH: loop header
LB: loop body
LE: loop exit
PB: predicated region body
PF: predicated region fallthrough
CT: control target
= control target key end

     0   :  { %s1051_s12 = smov 0   ;;  %s1240_s0 = inlined_call_operand.vmem [shape: f32[64,784], index: 0, kind: input, shape index: {}]   ;;  %s1241_s1 = inlined_call_operand.vmem [shape: bf16[784,10], index: 1, kind: input, shape index: {}]   ;;  %s1242_s2 = inlined_call_operand.vmem [shape: f32[1,10], index: 2, kind: input, shape index: {}]   ;;  %s1243_s3 = inlined_call_operand.vmem [shape: f32[64,10], index: 3, kind: output, shape index: {}]  }
   0x1 LB: > { %s825_s13 = sadd.s32 4294967295, %s1027_s12   ;;  %p829_p0 = scmp.ge.s32.totalorder %s1027_s12, 1  ;;  %s1027_s12 = sphi %s1051_s12, %s13_s12  }
   0x2   : > { %p139_p1 = scmp.lt.s32.totalorder %s1027_s12, 5 }
   0x4   : > { %p140_p2 = pnand %p829_p0, %p139_p1 }
   0x5   : > { %v972_v0 = vld [vmem:[%s1241_s1 + $0x40] sm:$0xff] (!%p140_p2)   ;;  %v976_v4 = vld [vmem:[%s1241_s1 + $0x48] sm:$0xff] (!%p140_p2)   ;;  %v980_v8 = vld [vmem:[%s1241_s1 + $0x50] sm:$0xff] (!%p140_p2)   ;;  %s830_s17 = sshll.u32 (!%p140_p2), %s825_s13, 1  ;;  %v1029_v43 = vmov (!%p140_p2), 0.0   ;;  %vm1030_vm0 = vmmov (!%p140_p2), 0  }
   0x6   : > { %143 = sbr.rel (%p140_p2) target bundleno = 292 (0x124), region = 32  ;;  %v973_v1 = vld [vmem:[%s1241_s1] sm:$0xff] (!%p140_p2)   ;;  %887 = vmatprep.subr.bf16.mxu0 (!%p140_p2), %v972_v0  ;;  %v977_v5 = vld [vmem:[%s1241_s1 + $0x8] sm:$0xff] (!%p140_p2)   ;;  %v981_v9 = vld [vmem:[%s1241_s1 + $0x10] sm:$0xff] (!%p140_p2)   ;;  %p165_p3 = scmp.lt.s32.totalorder (!%p140_p2), %s830_s17, 7  ;;  %vm598_vm1 = vcmask (!%p140_p2), 130048  }
   0x7   : > { %v974_v2 = vld [vmem:[%s1241_s1 + $0xc0] sm:$0xff] (!%p140_p2)   ;;  %888 = vmatpush3.bf16.msra.mxu0 (!%p140_p2), %v973_v1  ;;  %v978_v6 = vld [vmem:[%s1241_s1 + $0xc8] sm:$0xff] (!%p140_p2)   ;;  %v982_v10 = vld [vmem:[%s1241_s1 + $0xd0] sm:$0xff] (!%p140_p2)   ;;  %vm766_vm2 = vcmask (!%p140_p2), 80896  }
   0x8   : > { %v975_v3 = vld [vmem:[%s1241_s1 + $0x80] sm:$0xff] (!%p140_p2)   ;;  %909 = vmatprep.subr.bf16.mxu1 (!%p140_p2), %v974_v2  ;;  %889 = vmatprep.subr.bf16.mxu0 (!%p140_p2), %v976_v4  ;;  %v979_v7 = vld [vmem:[%s1241_s1 + $0x88] sm:$0xff] (!%p140_p2)   ;;  %v983_v11 = vld [vmem:[%s1241_s1 + $0x90] sm:$0xff] (!%p140_p2)  }
   0x9   : > { %910 = vmatpush3.bf16.msra.mxu1 (!%p140_p2), %v975_v3  ;;  %v984_v12 = vld [vmem:[%s1241_s1 + $0x58] sm:$0xff] (!%p140_p2)   ;;  %v988_v16 = vld [vmem:[%s1241_s1 + $0x60] sm:$0xff] (!%p140_p2)   ;;  %v992_v20 = vld [vmem:[%s1241_s1 + $0x68] sm:$0xff] (!%p140_p2)  }
   0xa   : > { %911 = vmatprep.subr.bf16.mxu1 (!%p140_p2), %v978_v6  ;;  %v985_v13 = vld [vmem:[%s1241_s1 + $0x18] sm:$0xff] (!%p140_p2)   ;;  %v989_v17 = vld [vmem:[%s1241_s1 + $0x20] sm:$0xff] (!%p140_p2)   ;;  %v993_v21 = vld [vmem:[%s1241_s1 + $0x28] sm:$0xff] (!%p140_p2)  }
   0xb   : > { %890 = vmatpush3.bf16.msra.mxu0 (!%p140_p2), %v977_v5  ;;  %v986_v14 = vld [vmem:[%s1241_s1 + $0xd8] sm:$0xff] (!%p140_p2)   ;;  %v990_v18 = vld [vmem:[%s1241_s1 + $0xe0] sm:$0xff] (!%p140_p2)   ;;  %v994_v22 = vld [vmem:[%s1241_s1 + $0xe8] sm:$0xff] (!%p140_p2)  }
   0xc   : > { %891 = vmatprep.subr.bf16.mxu0 (!%p140_p2), %v980_v8  ;;  %v987_v15 = vld [vmem:[%s1241_s1 + $0x98] sm:$0xff] (!%p140_p2)   ;;  %v991_v19 = vld [vmem:[%s1241_s1 + $0xa0] sm:$0xff] (!%p140_p2)   ;;  %v995_v23 = vld [vmem:[%s1241_s1 + $0xa8] sm:$0xff] (!%p140_p2)  }
   0xd   : > { %912 = vmatpush3.bf16.msra.mxu1 %v979_v7  ;;  %s1245_s17 = smov (!%p165_p3, %s830_s17), 7  ;;  %v996_v24 = vld [vmem:[%s1241_s1 + $0x70] sm:$0xff]   ;;  %v1000_v28 = vld [vmem:[%s1241_s1 + $0x78] sm:$0xff]   ;;  %v1004_v38 = vld [vmem:[%s1241_s1 + $0x140] sm:$0xff]  }
   0xe   : > { %913 = vmatprep.subr.bf16.mxu1 %v982_v10  ;;  %s961_s14 = smul.u32 56, %s1245_s17  ;;  %v997_v25 = vld [vmem:[%s1241_s1 + $0x30] sm:$0xff]   ;;  %v1001_v29 = vld [vmem:[%s1241_s1 + $0x38] sm:$0xff]   ;;  %v1005_v42 = vld [vmem:[%s1241_s1 + $0x100] sm:$0xff]  }
   0xf   : > { %892 = vmatpush3.bf16.msra.mxu0 %v981_v9  ;;  %v998_v26 = vld [vmem:[%s1241_s1 + $0xf0] sm:$0xff]   ;;  %v1002_v30 = vld [vmem:[%s1241_s1 + $0xf8] sm:$0xff]   ;;  %v1006_v47 = vld [vmem:[%s1241_s1 + $0x148] sm:$0xff]  }
  0x10   : > { %893 = vmatprep.subr.bf16.mxu0 %v984_v12  ;;  %v999_v27 = vld [vmem:[%s1241_s1 + $0xb0] sm:$0xff]   ;;  %s1154_s13 = scalar_lea.vmem %s1240_s0, %s961_s14  ;;  %v1003_v34 = vld [vmem:[%s1241_s1 + $0xb8] sm:$0xff]   ;;  %v1007_v48 = vld [vmem:[%s1241_s1 + $0x108] sm:$0xff]  }
  0x11   : > { %914 = vmatpush3.bf16.msra.mxu1 %v983_v11  ;;  %v179_v31 = vld [vmem:[%s1154_s13 + $0x8] sm:$0xff]  ;;  %v186_v32 = vld [vmem:[%s1154_s13 + $0x40] sm:$0xff]  ;;  %v185_v36 = vld [vmem:[%s1154_s13 + $0x38] sm:$0xff] }
  0x12   : > { %915 = vmatprep.subr.bf16.mxu1 %v986_v14  ;;  %v193_v33 = vpack.c.bf16 %v186_v32, %v179_v31  ;;  %v178_v35 = vld [vmem:[%s1154_s13] sm:$0xff]  ;;  %v181_v39 = vld [vmem:[%s1154_s13 + $0x18] sm:$0xff]  ;;  %v188_v40 = vld [vmem:[%s1154_s13 + $0x50] sm:$0xff] }
  0x13   : > { %894 = vmatpush3.bf16.msra.mxu0 %v985_v13  ;;  %v192_v37 = vpack.c.bf16 %v185_v36, %v178_v35  ;;  %v195_v41 = vpack.c.bf16 %v188_v40, %v181_v39  ;;  %v180_v44 = vld [vmem:[%s1154_s13 + $0x10] sm:$0xff]  ;;  %v187_v45 = vld [vmem:[%s1154_s13 + $0x48] sm:$0xff]  ;;  %v1010_v51 = vld [vmem:[%s1241_s1 + $0x158] sm:$0xff]  }
  0x14   : > { %895 = vmatprep.subr.bf16.mxu0 %v988_v16  ;;  %634 = vmatprep.mubr.bf16.mxu0 %v193_v33  ;;  %v194_v46 = vpack.c.bf16 %v187_v45, %v180_v44  ;;  %v1008_v49 = vld [vmem:[%s1241_s1 + $0x150] sm:$0xff]   ;;  %v1011_v52 = vld [vmem:[%s1241_s1 + $0x118] sm:$0xff]   ;;  %v1012_v53 = vld [vmem:[%s1241_s1 + $0x160] sm:$0xff]  }
  0x15   : > { %916 = vmatpush3.bf16.msra.mxu1 %v987_v15  ;;  %675 = vmatprep.mubr.bf16.mxu1 %v195_v41  ;;  %v1009_v50 = vld [vmem:[%s1241_s1 + $0x110] sm:$0xff]   ;;  %v1013_v54 = vld [vmem:[%s1241_s1 + $0x120] sm:$0xff]   ;;  %v1014_v55 = vld [vmem:[%s1241_s1 + $0x168] sm:$0xff]  }
  0x16   : > { %917 = vmatprep.subr.bf16.mxu1 %v990_v18  ;;  %v1020_v56 = vld [vmem:[%s1241_s1 + $0x180] sm:$0xff]   ;;  %v183_v57 = vld [vmem:[%s1154_s13 + $0x28] sm:$0xff]  ;;  %v184_v61 = vld [vmem:[%s1154_s13 + $0x30] sm:$0xff] }
  0x17   : > { %896 = vmatpush3.bf16.msra.mxu0 %v989_v17  ;;  %v190_v58 = vld [vmem:[%s1154_s13 + $0x60] sm:$0xff]  ;;  %v1015_v59 = vld [vmem:[%s1241_s1 + $0x128] sm:$0xff]   ;;  %v1016_v63 = vld [vmem:[%s1241_s1 + $0x170] sm:$0xff]  }
  0x18   : > { %897 = vmatprep.subr.bf16.mxu0 %v992_v20  ;;  %v197_v60 = vpack.c.bf16 %v190_v58, %v183_v57  ;;  %v191_v62 = vld [vmem:[%s1154_s13 + $0x68] sm:$0xff]  ;;  %v1017_v1 = vld [vmem:[%s1241_s1 + $0x130] sm:$0xff]   ;;  %v1018_v2 = vld [vmem:[%s1241_s1 + $0x178] sm:$0xff]  }
  0x19   : > { %918 = vmatpush3.bf16.msra.mxu1 %v991_v19  ;;  %v198_v0 = vpack.c.bf16 %v191_v62, %v184_v61  ;;  %v1019_v3 = vld [vmem:[%s1241_s1 + $0x138] sm:$0xff]   ;;  %v182_v4 = vld [vmem:[%s1154_s13 + $0x20] sm:$0xff] }
  0x1a   : > { %919 = vmatprep.subr.bf16.mxu1 %v994_v22  ;;  %v189_v5 = vld [vmem:[%s1154_s13 + $0x58] sm:$0xff]  ;;  %v834_v8 = vld [vmem:[%s1242_s2] ss:$0 sm:$0xff]  ;;  %s833_s13 = sshll.u32 %s1245_s17, 3 }
  0x1b   : > { %898 = vmatpush3.bf16.msra.mxu0 %v993_v21  ;;  %v196_v6 = vpack.c.bf16 %v189_v5, %v182_v4  ;;  %s175_s22 = scalar_lea.vmem %s1243_s3, %s833_s13 }
  0x1c   : > { %899 = vmatprep.subr.bf16.mxu0 %v996_v24 }
  0x1d   : > { %920 = vmatpush3.bf16.msra.mxu1 %v995_v23 }
  0x1e   : > { %921 = vmatprep.subr.bf16.mxu1 %v998_v26 }
  0x1f   : > { %900 = vmatpush3.bf16.msra.mxu0 %v997_v25 }
  0x20   : > { %901 = vmatprep.subr.bf16.mxu0 %v1000_v28 }
  0x21   : > { %922 = vmatpush3.bf16.msra.mxu1 %v999_v27 }
  0x22   : > { %923 = vmatprep.subr.bf16.mxu1 %v1002_v30 }
  0x23   : > { %902 = vmatpush3.bf16.msra.mxu0 %v1001_v29 }
  0x24   : > { %931 = vmatprep.subr.bf16.mxu0 %v1004_v38 }
  0x25   : > { %924 = vmatpush3.bf16.msra.mxu1 %v1003_v34 }
  0x26   : > { %955 = vmatprep.subr.bf16.mxu1 %v1029_v43  ;;  %635 = vmatmul.mubr.bf16.vlgmr.msra.gmra.mrb[0].mxu0 %v192_v37 }
  0x27   : > { %932 = vmatpush3.bf16.msra.mxu0 %v1005_v42  ;;  %716 = vmatprep.mubr.bf16.mxu0 %v197_v60 }
  0x28   : > { %676 = vmatmul.mubr.bf16.vlgmr.msra.gmra.mrb[0].mxu1 %v194_v46  ;;  %933 = vmatprep.subr.bf16.mxu0 %v1006_v47 }
  0x29   : > { %957 = vmatprep.mubr.msk.bf16.mxu1 %vm1030_vm0, %v1029_v43  ;;  %956 = vmatpush3.bf16.msra.mxu1 %v1020_v56 }
  0x2b   : > { %934 = vmatpush3.bf16.msra.mxu0 %v1007_v48 }
  0x2c   : > { %935 = vmatprep.subr.bf16.mxu0 %v1008_v49 }
  0x2f   : > { %936 = vmatpush3.bf16.msra.mxu0 %v1009_v50 }
  0x30   : > { %937 = vmatprep.subr.bf16.mxu0 %v1010_v51  ;;  %958 = vmatmul.mubr.msk.bf16.vlgmr.msra.gmra.mrb[4].mxu1 %vm598_vm1, %v198_v0 }
  0x33   : > { %938 = vmatpush3.bf16.msra.mxu0 %v1011_v52 }
  0x34   : > { %939 = vmatprep.subr.bf16.mxu0 %v1012_v53 }
  0x37   : > { %940 = vmatpush3.bf16.msra.mxu0 %v1013_v54 }
  0x38   : > { %941 = vmatprep.subr.bf16.mxu0 %v1014_v55 }
  0x3b   : > { %942 = vmatpush3.bf16.msra.mxu0 %v1015_v59 }
  0x3c   : > { %943 = vmatprep.subr.bf16.mxu0 %v1016_v63 }
  0x3f   : > { %944 = vmatpush3.bf16.msra.mxu0 %v1017_v1 }
  0x40   : > { %945 = vmatprep.subr.bf16.mxu0 %v1018_v2 }
  0x43   : > { %946 = vmatpush3.bf16.msra.mxu0 %v1019_v3 }
  0x46   : > { %717 = vmatmul.mubr.bf16.vlgmr.msra.gmra.mrb[4].mxu0 %v196_v6 }
  0xf9   : > { %v903_v7 = vpop.f32.mrb[0].mxu0 }
  0xfa   : > { %v904_v9 = vpop.f32.mrb[1].mxu0 }
  0xfb   : > { %v905_v10 = vadd.f32 %v904_v9, %v903_v7  ;;  %v906_v11 = vpop.f32.mrb[2].mxu0  ;;  %v925_v12 = vpop.f32.mrb[0].mxu1 }
  0xfc   : > { %v907_v13 = vpop.f32.mrb[3].mxu0  ;;  %v926_v16 = vpop.f32.mrb[1].mxu1 }
  0xfd   : > { %v637_v14 = vadd.f32 %v905_v10, %v834_v8  ;;  %v908_v15 = vadd.f32 %v907_v13, %v906_v11  ;;  %v927_v17 = vadd.f32 %v926_v16, %v925_v12  ;;  %v928_v18 = vpop.f32.mrb[2].mxu1 }
  0xfe   : > { %v929_v20 = vpop.f32.mrb[3].mxu1 }
  0xff   : > { %v640_v19 = vadd.f32 %v908_v15, %v834_v8  ;;  %v678_v21 = vadd.f32 %v927_v17, %v637_v14  ;;  %v930_v22 = vadd.f32 %v929_v20, %v928_v18 }
 0x101   : > { %v681_v23 = vadd.f32 %v930_v22, %v640_v19 }
 0x103   : > { %v759_v24 = vpop.f32.mrb[4].mxu1 }
 0x104   : > { %v959_v25 = vpop.f32.mrb[5].mxu1 }
 0x105   : > { %v762_v26 = vpop.f32.mrb[6].mxu1 }
 0x106   : > { %v960_v27 = vpop.f32.mrb[7].mxu1 }
 0x119   : > { %v947_v28 = vpop.f32.mrb[4].mxu0 }
 0x11a   : > { %v948_v29 = vpop.f32.mrb[5].mxu0 }
 0x11b   : > { %v949_v30 = vadd.f32 %v948_v29, %v947_v28  ;;  %v950_v31 = vpop.f32.mrb[6].mxu0 }
 0x11c   : > { %v951_v32 = vpop.f32.mrb[7].mxu0 }
 0x11d   : > { %v719_v33 = vadd.f32 %v949_v30, %v678_v21  ;;  %v952_v34 = vadd.f32 %v951_v32, %v950_v31 }
 0x11f   : > { %v760_v35 = vadd.f32 %v759_v24, %v719_v33  ;;  %v722_v36 = vadd.f32 %v952_v34, %v681_v23 }
 0x121   : > { %767 = vst.msk [vmem:[%s175_s22] sm:$0xff] %vm766_vm2, %v760_v35  ;;  %v763_v37 = vadd.f32 %v762_v26, %v722_v36 }
 0x123   : > { %768 = vst.msk [vmem:[%s175_s22 + $0x8] sm:$0xff] %vm766_vm2, %v763_v37 }
 0x124 PF: > { %s13_s12 = sadd.s32 1, %s1027_s12  }
 0x125   : > { %p10_p4 = scmp.ge.s32.totalorder %s13_s12, 6  }
 0x127   :  { %12 = sbr.rel (!%p10_p4) target bundleno = 1 (0x1), region = 62 }

</bundles_post_ra>
